<compile_context>
chip_gen: v6e
topology: v6e:2x2x1
jax: 0.10.0
libtpu: 0.0.40
codegen_flags: <defaults>
</compile_context>

<pallas_src>
import math

import jax
import jax.numpy as jnp
from jax.experimental import pallas as pl
from jax.experimental.pallas import tpu as pltpu


def _pooled_attention_kernel(x_ref, wkv_ref, bkv_ref, sqT_ref, mv_ref,
                             o_ref, a_ref):
    TB, C, H = x_ref.shape
    Dkv = wkv_ref.shape[1]
    nh = sqT_ref.shape[1]

    # Fused K/V projection: one (TB*C, H) @ (H, Dk+Dv) MXU matmul.
    x2 = x_ref[...].reshape(TB * C, H)
    kv = jnp.dot(x2, wkv_ref[...],
                 preferred_element_type=jnp.float32) + bkv_ref[...]          # (TB*C, Dkv)

    # Per-head scores against the learned seed.
    # sqT = [ (head_mask_k * S / sqrt(dim_split)).T ; zeros over the V rows ],
    # so the V columns of kv contribute nothing -> no in-kernel slicing needed.
    scores = jnp.dot(kv, sqT_ref[...],
                     preferred_element_type=jnp.float32)                     # (TB*C, nh)
    scores3 = scores.reshape(TB, C, nh)

    # Softmax over the set dimension C (per batch element, per head).
    m = jnp.max(scores3, axis=1, keepdims=True)                              # (TB, 1, nh)
    e = jnp.exp(scores3 - m)
    denom = jnp.sum(e, axis=1, keepdims=True)
    attn = e * pl.reciprocal(denom, approx=True)                             # (TB, C, nh)

    a_ref[...] = attn.astype(a_ref.dtype)

    # Attention-weighted pooling.  mv = [zeros over K cols ; head one-hot over V
    # cols], so attn_full carries the per-column head weight on the V columns
    # and 0 on the K columns; the wrapper slices out the V half of O.
    attn_full = jnp.dot(attn.reshape(TB * C, nh), mv_ref[...],
                        preferred_element_type=jnp.float32)                  # (TB*C, Dkv)
    o_full = jnp.sum((attn_full * kv).reshape(TB, C, Dkv), axis=1)           # (TB, Dkv)
    o_ref[...] = o_full.astype(o_ref.dtype)


def pooled_attention(x, wk, bk, wv, bv, s, *, num_heads, block_b=None):
    """x: (B, C, H) float32.  wk/wv: (dim, H) torch-Linear layout, bk/bv: (dim,),
    s: (1, dim_k).  Returns (O, A) matching the PyTorch module:
      O: (B, 1, dim_v),  A: (num_heads*B, 1, C)."""
    B, C, H = x.shape
    dim_k = wk.shape[0]
    dim_v = wv.shape[0]
    assert dim_v % num_heads == 0
    assert dim_k == dim_v, "kernel assumes dim_k == dim_v (as the torch splits require)"
    dim_split = dim_v // num_heads
    Dkv = dim_k + dim_v

    # ---- host-side (loop-invariant) preprocessing ---------------------------
    # Fused, pre-transposed projection weight/bias: y = x @ W_kv + b_kv.
    wkv = jnp.concatenate([wk.T, wv.T], axis=1).astype(jnp.float32)          # (H, Dkv)
    bkv = jnp.concatenate([bk, bv]).reshape(1, Dkv).astype(jnp.float32)      # (1, Dkv)

    # Block-diagonal head one-hot: onehot[h, d] = 1 iff column d belongs to head h.
    head_of_col = jnp.arange(dim_v) // dim_split
    onehot = (head_of_col[None, :] == jnp.arange(num_heads)[:, None]
              ).astype(jnp.float32)                                          # (nh, dim_v)
    scale = 1.0 / math.sqrt(dim_split)
    sq = onehot * s.reshape(1, dim_k).astype(jnp.float32) * scale            # (nh, dim_k)
    sqT = jnp.concatenate(
        [sq.T, jnp.zeros((dim_v, num_heads), jnp.float32)], axis=0)          # (Dkv, nh)
    mv = jnp.concatenate(
        [jnp.zeros((num_heads, dim_k), jnp.float32), onehot], axis=1)        # (nh, Dkv)

    # ---- batch tiling --------------------------------------------------------
    def _round_up(n, m):
        return ((n + m - 1) // m) * m

    if block_b is None:
        # ~256 fused projection rows per grid step; keep the tile a multiple of 8.
        block_b = max(8, ((256 // max(C, 1)) // 8) * 8)
    block_b = max(8, _round_up(block_b, 8))          # 8-sublane aligned output rows
    block_b = min(block_b, _round_up(B, 8))
    B_pad = _round_up(B, block_b)
    x_in = x.astype(jnp.float32)
    if B_pad != B:
        x_in = jnp.concatenate(
            [x_in, jnp.zeros((B_pad - B, C, H), jnp.float32)], axis=0)
    grid_b = B_pad // block_b

    o_full, a = pl.pallas_call(
        _pooled_attention_kernel,
        out_shape=(
            jax.ShapeDtypeStruct((B_pad, Dkv), jnp.float32),
            jax.ShapeDtypeStruct((B_pad, C, num_heads), jnp.float32),
        ),
        grid_spec=pltpu.PrefetchScalarGridSpec(
            num_scalar_prefetch=0,
            grid=(grid_b,),
            in_specs=[
                pl.BlockSpec((block_b, C, H), lambda b: (b, 0, 0)),          # X tile
                pl.BlockSpec((H, Dkv), lambda b: (0, 0)),                    # W_kv
                pl.BlockSpec((1, Dkv), lambda b: (0, 0)),                    # b_kv
                pl.BlockSpec((Dkv, num_heads), lambda b: (0, 0)),            # seed*mask
                pl.BlockSpec((num_heads, Dkv), lambda b: (0, 0)),            # head mask (V)
            ],
            out_specs=[
                pl.BlockSpec((block_b, Dkv), lambda b: (b, 0)),              # O (K cols 0)
                pl.BlockSpec((block_b, C, num_heads), lambda b: (b, 0, 0)),  # A
            ],
        ),
        compiler_params=pltpu.CompilerParams(
            dimension_semantics=("parallel",)),
    )(x_in, wkv, bkv, sqT, mv)

    o = o_full[:B, dim_k:].reshape(B, 1, dim_v)
    # torch ordering: A[h*B + b, 0, c] = attn[b, c, h]
    a_torch = jnp.transpose(a[:B], (2, 0, 1)).reshape(num_heads * B, 1, C)
    return o, a_torch
    # TODO(synk): optional LayerNorm branch (ln=True) not implemented; module default is ln=False.


def reference(x, wk, bk, wv, bv, s, *, num_heads):
    """Pure-JAX transliteration of the PyTorch forward (for verification)."""
    B, C, H = x.shape
    dim_k = wk.shape[0]
    dim_v = wv.shape[0]
    dh = dim_v // num_heads
    K = x @ wk.T + bk
    V = x @ wv.T + bv
    Q = jnp.broadcast_to(s[None, :, :], (B, 1, dim_k))
    Q_ = jnp.concatenate(jnp.split(Q, num_heads, axis=2), axis=0)
    K_ = jnp.concatenate(jnp.split(K, num_heads, axis=2), axis=0)
    V_ = jnp.concatenate(jnp.split(V, num_heads, axis=2), axis=0)
    A = jax.nn.softmax(
        jnp.einsum('bqd,bkd->bqk', Q_, K_) / math.sqrt(dh), axis=2)
    O = jnp.concatenate(jnp.split(jnp.einsum('bqk,bkd->bqd', A, V_),
                                  num_heads, axis=0), axis=2)
    return O, A


if __name__ == "__main__":
    # Small shapes consistent with the module's forward: X is (B, C, H).
    C, H = 8, 32                # set size, input_dim
    dim_k = dim_v = 16
    num_heads = 4

    key = jax.random.PRNGKey(0)
    k_x, k_s, k_wk, k_bk, k_wv, k_bv, k_x2 = jax.random.split(key, 7)

    # Deterministic parameter init (xavier-uniform-like for S, linear-style fc_k/fc_v).
    s_bound = math.sqrt(6.0 / (1 + dim_k))
    s_param = jax.random.uniform(k_s, (1, dim_k), minval=-s_bound, maxval=s_bound,
                                 dtype=jnp.float32)
    w_bound = 1.0 / math.sqrt(H)
    wk = jax.random.uniform(k_wk, (dim_k, H), minval=-w_bound, maxval=w_bound,
                            dtype=jnp.float32)
    bk = jax.random.uniform(k_bk, (dim_k,), minval=-w_bound, maxval=w_bound,
                            dtype=jnp.float32)
    wv = jax.random.uniform(k_wv, (dim_v, H), minval=-w_bound, maxval=w_bound,
                            dtype=jnp.float32)
    bv = jax.random.uniform(k_bv, (dim_v,), minval=-w_bound, maxval=w_bound,
                            dtype=jnp.float32)

    # Config 1: tiny batch (B=2), single grid step (batch padded up to the tile).
    B1 = 2
    x1 = jax.random.normal(k_x, (B1, C, H), dtype=jnp.float32)
    o1, a1 = pooled_attention(x1, wk, bk, wv, bv, s_param, num_heads=num_heads)
    o1 = jax.block_until_ready(o1)
    a1 = jax.block_until_ready(a1)
    o1_ref, a1_ref = reference(x1, wk, bk, wv, bv, s_param, num_heads=num_heads)
    assert o1.shape == (B1, 1, dim_v)
    assert a1.shape == (num_heads * B1, 1, C)
    # approx reciprocal in the softmax -> slightly looser tolerance than exact f32.
    assert jnp.allclose(o1, o1_ref, atol=2e-3, rtol=2e-3)
    assert jnp.allclose(a1, a1_ref, atol=2e-3, rtol=2e-3)

    # Config 2: larger batch with an explicit batch tile -> multi-step grid + padding.
    B2 = 20
    x2 = jax.random.normal(k_x2, (B2, C, H), dtype=jnp.float32)
    o2, a2 = pooled_attention(x2, wk, bk, wv, bv, s_param, num_heads=num_heads,
                              block_b=8)
    o2 = jax.block_until_ready(o2)
    a2 = jax.block_until_ready(a2)
    o2_ref, a2_ref = reference(x2, wk, bk, wv, bv, s_param, num_heads=num_heads)
    assert o2.shape == (B2, 1, dim_v)
    assert a2.shape == (num_heads * B2, 1, C)
    assert jnp.allclose(o2, o2_ref, atol=2e-3, rtol=2e-3)
    assert jnp.allclose(a2, a2_ref, atol=2e-3, rtol=2e-3)

    print("KERNEL_OK")
</pallas_src>

<mosaic_0001>
module attributes {stable_mosaic.version = 11 : i64} {
  func.func @_pooled_attention_kernel(%arg0: i32, %arg1: memref<8x8x32xf32, #tpu.memory_space<vmem>>, %arg2: memref<32x32xf32, #tpu.memory_space<vmem>>, %arg3: memref<1x32xf32, #tpu.memory_space<vmem>>, %arg4: memref<32x4xf32, #tpu.memory_space<vmem>>, %arg5: memref<4x32xf32, #tpu.memory_space<vmem>>, %arg6: memref<8x32xf32, #tpu.memory_space<vmem>>, %arg7: memref<8x8x4xf32, #tpu.memory_space<vmem>>) attributes {dimension_semantics = [#tpu.dimension_semantics<parallel>], iteration_bounds = array<i64: 1>, scalar_prefetch = 0 : i64, scratch_operands = 0 : i64, tpu.core_type = #tpu.core_type<tc>, window_params = [{transform_indices = @transform_0, window_bounds = array<i64: 8, 8, 32>}, {pipeline_mode = #tpu.pipeline_mode<synchronous>, transform_indices = @transform_1, window_bounds = array<i64: 32, 32>}, {pipeline_mode = #tpu.pipeline_mode<synchronous>, transform_indices = @transform_2, window_bounds = array<i64: 1, 32>}, {pipeline_mode = #tpu.pipeline_mode<synchronous>, transform_indices = @transform_3, window_bounds = array<i64: 32, 4>}, {pipeline_mode = #tpu.pipeline_mode<synchronous>, transform_indices = @transform_4, window_bounds = array<i64: 4, 32>}, {transform_indices = @transform_5, window_bounds = array<i64: 8, 32>}, {transform_indices = @transform_6, window_bounds = array<i64: 8, 8, 4>}]} {
    %c0 = arith.constant 0 : index
    %c0_0 = arith.constant 0 : index
    %c0_1 = arith.constant 0 : index
    %0 = vector.load %arg1[%c0, %c0_0, %c0_1] : memref<8x8x32xf32, #tpu.memory_space<vmem>>, vector<8x8x32xf32>
    %1 = vector.shape_cast %0 : vector<8x8x32xf32> to vector<64x32xf32>
    %c0_2 = arith.constant 0 : index
    %c0_3 = arith.constant 0 : index
    %2 = vector.load %arg2[%c0_2, %c0_3] : memref<32x32xf32, #tpu.memory_space<vmem>>, vector<32x32xf32>
    %cst = arith.constant dense<0.000000e+00> : vector<64x32xf32>
    %3 = tpu.matmul %1, %2, %cst {dimension_numbers = #tpu.dot_dimension_numbers<[1], [0], [0], [1], [0, 0, 1, 1], [], []>} : vector<64x32xf32>, vector<32x32xf32>, vector<64x32xf32> -> vector<64x32xf32>
    %c0_4 = arith.constant 0 : index
    %c0_5 = arith.constant 0 : index
    %4 = vector.load %arg3[%c0_4, %c0_5] : memref<1x32xf32, #tpu.memory_space<vmem>>, vector<1x32xf32>
    %5 = vector.broadcast %4 : vector<1x32xf32> to vector<64x32xf32>
    %6 = arith.addf %3, %5 : vector<64x32xf32>
    %c0_6 = arith.constant 0 : index
    %c0_7 = arith.constant 0 : index
    %7 = vector.load %arg4[%c0_6, %c0_7] : memref<32x4xf32, #tpu.memory_space<vmem>>, vector<32x4xf32>
    %cst_8 = arith.constant dense<0.000000e+00> : vector<64x4xf32>
    %8 = tpu.matmul %6, %7, %cst_8 {dimension_numbers = #tpu.dot_dimension_numbers<[1], [0], [0], [1], [0, 0, 1, 1], [], []>} : vector<64x32xf32>, vector<32x4xf32>, vector<64x4xf32> -> vector<64x4xf32>
    %9 = vector.shape_cast %8 : vector<64x4xf32> to vector<8x8x4xf32>
    %cst_9 = arith.constant dense<0xFF800000> : vector<8x4xf32>
    %10 = vector.multi_reduction <maximumf>, %9, %cst_9 [1] : vector<8x8x4xf32> to vector<8x4xf32>
    %11 = vector.shape_cast %10 : vector<8x4xf32> to vector<8x1x4xf32>
    %12 = vector.broadcast %11 : vector<8x1x4xf32> to vector<8x8x4xf32>
    %13 = arith.subf %9, %12 : vector<8x8x4xf32>
    %14 = math.exp %13 : vector<8x8x4xf32>
    %cst_10 = arith.constant dense<0.000000e+00> : vector<8x4xf32>
    %15 = vector.multi_reduction <add>, %14, %cst_10 [1] : vector<8x8x4xf32> to vector<8x4xf32>
    %16 = vector.shape_cast %15 : vector<8x4xf32> to vector<8x1x4xf32>
    %17 = tpu.reciprocal %16 {approx = true} : vector<8x1x4xf32> -> vector<8x1x4xf32>
    %18 = vector.broadcast %17 : vector<8x1x4xf32> to vector<8x8x4xf32>
    %19 = arith.mulf %14, %18 : vector<8x8x4xf32>
    %c0_11 = arith.constant 0 : index
    %c0_12 = arith.constant 0 : index
    %c0_13 = arith.constant 0 : index
    %20 = vector.load %arg7[%c0_11, %c0_12, %c0_13] : memref<8x8x4xf32, #tpu.memory_space<vmem>>, vector<8x8x4xf32>
    tpu.vector_store %arg7[%c0_11, %c0_12, %c0_13], %19 {strides = array<i32>} : memref<8x8x4xf32, #tpu.memory_space<vmem>>, vector<8x8x4xf32>,
    %21 = vector.shape_cast %19 : vector<8x8x4xf32> to vector<64x4xf32>
    %c0_14 = arith.constant 0 : index
    %c0_15 = arith.constant 0 : index
    %22 = vector.load %arg5[%c0_14, %c0_15] : memref<4x32xf32, #tpu.memory_space<vmem>>, vector<4x32xf32>
    %cst_16 = arith.constant dense<0.000000e+00> : vector<64x32xf32>
    %23 = tpu.matmul %21, %22, %cst_16 {dimension_numbers = #tpu.dot_dimension_numbers<[1], [0], [0], [1], [0, 0, 1, 1], [], []>} : vector<64x4xf32>, vector<4x32xf32>, vector<64x32xf32> -> vector<64x32xf32>
    %24 = arith.mulf %23, %6 : vector<64x32xf32>
    %25 = vector.shape_cast %24 : vector<64x32xf32> to vector<8x8x32xf32>
    %cst_17 = arith.constant dense<0.000000e+00> : vector<8x32xf32>
    %26 = vector.multi_reduction <add>, %25, %cst_17 [1] : vector<8x8x32xf32> to vector<8x32xf32>
    %c0_18 = arith.constant 0 : index
    %c0_19 = arith.constant 0 : index
    %27 = vector.load %arg6[%c0_18, %c0_19] : memref<8x32xf32, #tpu.memory_space<vmem>>, vector<8x32xf32>
    tpu.vector_store %arg6[%c0_18, %c0_19], %26 {strides = array<i32>} : memref<8x32xf32, #tpu.memory_space<vmem>>, vector<8x32xf32>,
    return
  }
  func.func @transform_0(%arg0: i32) -> (i32, i32, i32) {
    %c0_i32 = arith.constant 0 : i32
    %c0_i32_0 = arith.constant 0 : i32
    %c0_i32_1 = arith.constant 0 : i32
    return %arg0, %c0_i32, %c0_i32_0 : i32, i32, i32
  }
  func.func @transform_1(%arg0: i32) -> (i32, i32) {
    %c0_i32 = arith.constant 0 : i32
    %c0_i32_0 = arith.constant 0 : i32
    %c0_i32_1 = arith.constant 0 : i32
    return %c0_i32, %c0_i32_0 : i32, i32
  }
  func.func @transform_2(%arg0: i32) -> (i32, i32) {
    %c0_i32 = arith.constant 0 : i32
    %c0_i32_0 = arith.constant 0 : i32
    %c0_i32_1 = arith.constant 0 : i32
    return %c0_i32, %c0_i32_0 : i32, i32
  }
  func.func @transform_3(%arg0: i32) -> (i32, i32) {
    %c0_i32 = arith.constant 0 : i32
    %c0_i32_0 = arith.constant 0 : i32
    %c0_i32_1 = arith.constant 0 : i32
    return %c0_i32, %c0_i32_0 : i32, i32
  }
  func.func @transform_4(%arg0: i32) -> (i32, i32) {
    %c0_i32 = arith.constant 0 : i32
    %c0_i32_0 = arith.constant 0 : i32
    %c0_i32_1 = arith.constant 0 : i32
    return %c0_i32, %c0_i32_0 : i32, i32
  }
  func.func @transform_5(%arg0: i32) -> (i32, i32) {
    %c0_i32 = arith.constant 0 : i32
    %c0_i32_0 = arith.constant 0 : i32
    return %arg0, %c0_i32 : i32, i32
  }
  func.func @transform_6(%arg0: i32) -> (i32, i32, i32) {
    %c0_i32 = arith.constant 0 : i32
    %c0_i32_0 = arith.constant 0 : i32
    %c0_i32_1 = arith.constant 0 : i32
    return %arg0, %c0_i32, %c0_i32_0 : i32, i32, i32
  }
}

</mosaic_0001>

<bundles_post_ra>
// kernel: tpu_custom_call.1
= control target key start
LH: loop header
LB: loop body
LE: loop exit
PB: predicated region body
PF: predicated region fallthrough
CT: control target
= control target key end

     0   :  { %12 = vsyncpa [#allocation3], 0  ;;  %s1139_s0 = inlined_call_operand.hbm [shape: f32[8,8,32], index: 0, kind: input, shape index: {}]   ;;  %s1140_s1 = inlined_call_operand.vmem [shape: f32[32,32], index: 1, kind: input, shape index: {}]   ;;  %s1141_s2 = inlined_call_operand.vmem [shape: f32[1,32], index: 2, kind: input, shape index: {}]   ;;  %s1142_s3 = inlined_call_operand.vmem [shape: f32[32,4], index: 3, kind: input, shape index: {}]   ;;  %s1143_s4 = inlined_call_operand.vmem [shape: f32[4,32], index: 4, kind: input, shape index: {}]   ;;  %s1144_s5 = inlined_call_operand.hbm [shape: f32[8,32], index: 5, kind: output, shape index: {0}]   ;;  %s1145_s6 = inlined_call_operand.vmem [shape: f32[8,8,4], index: 6, kind: output, shape index: {1}]  }
   0x1   :  { %13 = vsyncpa [#allocation4], 0  ;;  %s922_s21 = smov [#allocation2]  }
   0x2   :  { %s19_s22 = sshll.u32 %s922_s21, 4  ;;  %s20_s22 = int_to_ptr.vmem [resolvable:$true] %s19_s22 }
   0x3   :  { %s886_s23 = scalar_lea.vmem %s20_s22, 1024  ;;  %p891_p1 = scmp.lt.s32.totalorder %s20_s22, %s20_s22 }
   0x4   :  { %p887_p0 = scmp.ne.s32.totalorder %s20_s22, %s886_s23  ;;  %p892_p2 = scmp.lt.s32.totalorder %s886_s23, %s886_s23 }
   0x6   :  { %p893_p3 = por %p892_p2, %p891_p1 }
   0x8   :  { %p894_p4 = pnand %p893_p3, %p887_p0 }
   0xa   :  { %897 = shalt.err (!%p894_p4)
}
   0xb   :  { %s923_s24 = smov 128   ;;  %s924_s25 = smov 8  }
   0xc   :  { %25 = dma.hbm_to_vmem [thread:$0]  %s1139_s0, 1024, %s20_s22, [#allocation3], %s923_s24, %s923_s24, %s924_s25  }
   0xd   :  { %918 = dma.done.wait [#allocation3], 1024  }
   0xe   :  { %919 = vsyncadd [#allocation3], 4294966272  ;;  %v48_v0 = vld [vmem:[%s1140_s1 + $0x18] sm:$0xff]  ;;  %v47_v1 = vld [vmem:[%s1140_s1 + $0x10] sm:$0xff]  ;;  %vm56_vm0 = vcmask 261120   ;;  %vm505_vm1 = vcmask 1043456  }
   0xf   :  { %780 = vmatprep.subr.mxu0 %v48_v0  ;;  %834 = vmatprep.subr.mxu1 %v48_v0  ;;  %v37_v2 = vld [vmem:[#allocation2] sm:$0xff]  ;;  %v46_v3 = vld [vmem:[%s1140_s1 + $0x8] sm:$0xff]  ;;  %v39_v6 = vld [vmem:[#allocation2 + $0x10] sm:$0xff]  ;;  %vm319_vm2 = vcmask 31744   ;;  %vm686_vm3 = vcmask 1041409   ;;  %vm688_vm4 = vcmask 1042434  }
  0x10   :  { %781 = vmatpush3.msra.mxu0 %v48_v0  ;;  %838 = vmatpush3.msra.mxu1 %v48_v0  ;;  %v45_v4 = vld [vmem:[%s1140_s1] sm:$0xff]  ;;  %v38_v5 = vld [vmem:[#allocation2 + $0x8] sm:$0xff]  ;;  %v189_v9 = vld [vmem:[%s1142_s3 + $0x18] sm:$0xff]  ;;  %vm690_vm5 = vcmask 1043459   ;;  %vm692_vm6 = vcmask 1044484   ;;  %vm694_vm7 = vcmask 1045509  }
  0x11   :  { %782 = vmatprep.subr.mxu0 %v47_v1  ;;  %788 = vmatprep.mubr.msk.f32.mxu0 %vm56_vm0, %v37_v2  ;;  %v41_v7 = vld [vmem:[#allocation2 + $0x20] sm:$0xff]  ;;  %v42_v8 = vld [vmem:[#allocation2 + $0x28] sm:$0xff]  ;;  %v43_v10 = vld [vmem:[#allocation2 + $0x30] sm:$0xff]  ;;  %vm696_vm8 = vcmask 1046534   ;;  %vm698_vm9 = vcmask 1047559  }
  0x12   :  { %783 = vmatpush3.msra.mxu0 %v47_v1  ;;  %835 = vmatprep.subr.mxu1 %v47_v1  ;;  %v40_v11 = vld [vmem:[#allocation2 + $0x18] sm:$0xff]  ;;  %v188_v12 = vld [vmem:[%s1142_s3 + $0x10] sm:$0xff]  ;;  %v187_v14 = vld [vmem:[%s1142_s3 + $0x8] sm:$0xff] }
  0x13   :  { %784 = vmatprep.subr.mxu0 %v46_v3  ;;  %839 = vmatpush3.msra.mxu1 %v47_v1  ;;  %v44_v13 = vld [vmem:[#allocation2 + $0x38] sm:$0xff]  ;;  %v186_v15 = vld [vmem:[%s1142_s3] sm:$0xff] }
  0x14   :  { %785 = vmatpush3.msra.mxu0 %v46_v3  ;;  %836 = vmatprep.subr.mxu1 %v46_v3  ;;  %v721_v17 = vld [vmem:[%s1141_s2] ss:$0 sm:$0xff] }
  0x15   :  { %786 = vmatprep.subr.mxu0 %v45_v4  ;;  %840 = vmatpush3.msra.mxu1 %v46_v3  ;;  %v480_v33 = vld [vmem:[%s1143_s4] sm:$0xf] }
  0x16   :  { %787 = vmatpush3.msra.mxu0 %v45_v4  ;;  %837 = vmatprep.subr.mxu1 %v45_v4 }
  0x17   :  { %789 = vmatmul.mubr.msk.f32.vlgmr.msra.gmra.mxu0 %vm56_vm0, %v38_v5  ;;  %841 = vmatpush3.msra.mxu1 %v45_v4 }
  0x18   :  { %791 = vmatprep.mubr.msk.f32.mxu0 %vm56_vm0, %v39_v6  ;;  %794 = vmatprep.mubr.msk.f32.mxu1 %vm56_vm0, %v41_v7 }
  0x19   :  { %795 = vmatmul.mubr.msk.f32.vlgmr.msra.gmra.mxu1 %vm56_vm0, %v42_v8  ;;  %800 = vmatprep.subr.mxu1 %v189_v9 }
  0x1a   :  { %797 = vmatprep.mubr.msk.f32.mxu1 %vm56_vm0, %v43_v10  ;;  %801 = vmatpush3.msra.mxu1 %v189_v9 }
  0x1b   :  { %792 = vmatmul.mubr.msk.f32.gmra.mxu0 %vm56_vm0, %v40_v11  ;;  %802 = vmatprep.subr.mxu1 %v188_v12 }
  0x1c   :  { %803 = vmatpush3.msra.mxu1 %v188_v12  ;;  %820 = vmatprep.subr.msk.mxu0 %vm505_vm1, %v480_v33 }
  0x1d   :  { %798 = vmatmul.mubr.msk.f32.gmra.mxu1 %vm56_vm0, %v44_v13  ;;  %804 = vmatprep.subr.mxu1 %v187_v14 }
  0x1e   :  { %805 = vmatpush3.msra.mxu1 %v187_v14  ;;  %821 = vmatpush3.msk.msra.mxu0 %vm505_vm1, %v480_v33 }
  0x1f   :  { %806 = vmatprep.subr.mxu1 %v186_v15 }
  0x20   :  { %807 = vmatpush3.msra.mxu1 %v186_v15 }
  0xd7   :  { %v790_v16 = vpop.f32.mrf.mxu0 }
  0xd8   :  { %v1001_v21 = vadd.f32 %v790_v16, %v721_v17 }
  0xd9   :  { %v147_v18 = vpop.f32.mrf.mxu0  ;;  %v796_v19 = vpop.f32.mrf.mxu1 }
  0xda   :  { %v999_v20 = vadd.f32 %v721_v17, %v147_v18  ;;  %v1021_v31 = vadd.f32 %v796_v19, %v721_v17 }
  0xdb   :  { %v793_v22 = vpop.f32.mrf.mxu0  ;;  %v167_v23 = vpop.f32.mrf.mxu1 }
  0xdc   :  { %808 = vmatprep.mubr.msk.f32.mxu1 %vm56_vm0, %v999_v20  ;;  %v1009_v27 = vadd.f32 %v721_v17, %v167_v23  ;;  %v1011_v28 = vadd.f32 %v793_v22, %v721_v17 }
  0xdd   :  { %v157_v24 = vpop.f32.mrf.mxu0  ;;  %809 = vmatmul.mubr.msk.f32.vlgmr.msra.gmra.mxu1 %vm56_vm0, %v1001_v21  ;;  %v799_v25 = vpop.f32.mrf.mxu1 }
  0xde   :  { %v1007_v26 = vadd.f32 %v721_v17, %v157_v24  ;;  %v1027_v32 = vadd.f32 %v799_v25, %v721_v17 }
  0xdf   :  { %v177_v29 = vpop.f32.mrf.mxu1 }
  0xe0   :  { %811 = vmatprep.mubr.msk.f32.mxu1 %vm56_vm0, %v1007_v26  ;;  %v1019_v30 = vadd.f32 %v721_v17, %v177_v29 }
  0xe1   :  { %812 = vmatmul.mubr.msk.f32.gmra.mxu1 %vm56_vm0, %v1011_v28 }
  0xe2   :  { %814 = vmatprep.mubr.msk.f32.mxu1 %vm56_vm0, %v1009_v27 }
  0xe5   :  { %815 = vmatmul.mubr.msk.f32.gmra.mxu1 %vm56_vm0, %v1021_v31 }
  0xe6   :  { %817 = vmatprep.mubr.msk.f32.mxu1 %vm56_vm0, %v1019_v30 }
  0xe9   :  { %818 = vmatmul.mubr.msk.f32.gmra.mxu1 %vm56_vm0, %v1027_v32 }
 0x19d   :  { %v810_v34 = vpop.f32.mrf.mxu1 }
 0x19e   :  { %v327_v35 = vsel %vm319_vm2, %v810_v34, -inf }
 0x19f   :  { %v328_v36 = vrot.slane %v327_v35, 4  ;;  %v280_v37 = vpop.f32.mrf.mxu1 }
 0x1a0   :  { %v320_v38 = vsel %vm319_vm2, %v280_v37, -inf }
 0x1a1   :  { %v329_v39 = vmax.f32 %v327_v35, %v328_v36  ;;  %v321_v40 = vrot.slane %v320_v38, 4  ;;  %v813_v41 = vpop.f32.mrf.mxu1 }
 0x1a2   :  { %v341_v42 = vsel %vm319_vm2, %v813_v41, -inf }
 0x1a3   :  { %v330_v43 = vrot.slane %v329_v39, 2  ;;  %v322_v44 = vmax.f32 %v320_v38, %v321_v40  ;;  %v342_v45 = vrot.slane %v341_v42, 4  ;;  %v290_v46 = vpop.f32.mrf.mxu1 }
 0x1a4   :  { %v334_v47 = vsel %vm319_vm2, %v290_v46, -inf }
 0x1a5   :  { %v331_v48 = vmax.f32 %v329_v39, %v330_v43  ;;  %v323_v49 = vrot.slane %v322_v44, 2  ;;  %v343_v50 = vmax.f32 %v341_v42, %v342_v45  ;;  %v335_v51 = vrot.slane %v334_v47, 4  ;;  %v816_v52 = vpop.f32.mrf.mxu1 }
 0x1a6   :  { %v355_v53 = vsel %vm319_vm2, %v816_v52, -inf }
 0x1a7   :  { %v332_v54 = vrot.slane %v331_v48, 1  ;;  %v324_v55 = vmax.f32 %v322_v44, %v323_v49  ;;  %v344_v56 = vrot.slane %v343_v50, 2  ;;  %v336_v57 = vmax.f32 %v334_v47, %v335_v51  ;;  %v300_v58 = vpop.f32.mrf.mxu1 }
 0x1a8   :  { %v356_v59 = vrot.slane %v355_v53, 4  ;;  %v348_v60 = vsel %vm319_vm2, %v300_v58, -inf }
 0x1a9   :  { %v333_v61 = vmax.f32 %v331_v48, %v332_v54  ;;  %v325_v62 = vrot.slane %v324_v55, 1  ;;  %v345_v63 = vmax.f32 %v343_v50, %v344_v56  ;;  %v337_v0 = vrot.slane %v336_v57, 2  ;;  %v819_v1 = vpop.f32.mrf.mxu1 }
 0x1aa   :  { %v357_v2 = vmax.f32 %v355_v53, %v356_v59  ;;  %v349_v3 = vrot.slane %v348_v60, 4  ;;  %v369_v4 = vsel %vm319_vm2, %v819_v1, -inf }
 0x1ab   :  { %v377_v5 = vsub.f32 %v810_v34, %v333_v61  ;;  %v326_v6 = vmax.f32 %v324_v55, %v325_v62  ;;  %v346_v7 = vrot.slane %v345_v63, 1  ;;  %v338_v8 = vmax.f32 %v336_v57, %v337_v0  ;;  %v310_v9 = vpop.f32.mrf.mxu1 }
 0x1ac   :  { %v358_v10 = vrot.slane %v357_v2, 2  ;;  %v350_v11 = vmax.f32 %v348_v60, %v349_v3  ;;  %v370_v12 = vrot.slane %v369_v4, 4  ;;  %v362_v13 = vsel %vm319_vm2, %v310_v9, -inf }
 0x1ad   :  { %v386_v14 = vmul.f32 1.442695, %v377_v5  ;;  %v376_v15 = vsub.f32 %v280_v37, %v326_v6  ;;  %v347_v16 = vmax.f32 %v345_v63, %v346_v7  ;;  %v339_v17 = vrot.slane %v338_v8, 1 }
 0x1ae   :  { %v359_v18 = vmax.f32 %v357_v2, %v358_v10  ;;  %v351_v19 = vrot.slane %v350_v11, 2  ;;  %v371_v22 = vmax.f32 %v369_v4, %v370_v12  ;;  %v363_v23 = vrot.slane %v362_v13, 4 }
 0x1af   :  { %846 = vpow2.f32 %v386_v14  ;;  %v384_v24 = vmul.f32 1.442695, %v376_v15  ;;  %v379_v25 = vsub.f32 %v813_v41, %v347_v16  ;;  %v340_v29 = vmax.f32 %v338_v8, %v339_v17 }
 0x1b0   :  { %v360_v33 = vrot.slane %v359_v18, 1  ;;  %v352_v34 = vmax.f32 %v350_v11, %v351_v19  ;;  %v372_v35 = vrot.slane %v371_v22, 2  ;;  %v364_v36 = vmax.f32 %v362_v13, %v363_v23 }
 0x1b1   :  { %848 = vpow2.f32 %v384_v24  ;;  %v390_v38 = vmul.f32 1.442695, %v379_v25  ;;  %v378_v39 = vsub.f32 %v290_v46, %v340_v29 }
 0x1b2   :  { %v361_v40 = vmax.f32 %v359_v18, %v360_v33  ;;  %v353_v42 = vrot.slane %v352_v34, 1  ;;  %v373_v37 = vmax.f32 %v371_v22, %v372_v35  ;;  %v365_v43 = vrot.slane %v364_v36, 2 }
 0x1b3   :  { %850 = vpow2.f32 %v390_v38  ;;  %v388_v44 = vmul.f32 1.442695, %v378_v39 }
 0x1b4   :  { %v381_v45 = vsub.f32 %v816_v52, %v361_v40  ;;  %v354_v47 = vmax.f32 %v352_v34, %v353_v42  ;;  %v374_v48 = vrot.slane %v373_v37, 1  ;;  %v366_v49 = vmax.f32 %v364_v36, %v365_v43 }
 0x1b5   :  { %852 = vpow2.f32 %v388_v44 }
 0x1b6   :  { %v394_v41 = vmul.f32 1.442695, %v381_v45  ;;  %v380_v50 = vsub.f32 %v300_v58, %v354_v47  ;;  %v375_v51 = vmax.f32 %v373_v37, %v374_v48  ;;  %v367_v53 = vrot.slane %v366_v49, 1 }
 0x1b8   :  { %854 = vpow2.f32 %v394_v41  ;;  %v392_v54 = vmul.f32 1.442695, %v380_v50  ;;  %v383_v55 = vsub.f32 %v819_v1, %v375_v51  ;;  %v368_v56 = vmax.f32 %v366_v49, %v367_v53 }
 0x1ba   :  { %856 = vpow2.f32 %v392_v54  ;;  %v398_v46 = vmul.f32 1.442695, %v383_v55  ;;  %v382_v57 = vsub.f32 %v310_v9, %v368_v56 }
 0x1bc   :  { %v1042_v59 = vpop.eup %846  ;;  %858 = vpow2.f32 %v398_v46  ;;  %v396_v60 = vmul.f32 1.442695, %v382_v57 }
 0x1bd   :  { %v407_v52 = vsel %vm319_vm2, %v1042_v59, 0.0 }
 0x1be   :  { %v1046_v61 = vpop.eup %848  ;;  %v408_v62 = vrot.slane %v407_v52, 4  ;;  %860 = vpow2.f32 %v396_v60 }
 0x1bf   :  { %v400_v58 = vsel %vm319_vm2, %v1046_v61, 0.0 }
 0x1c0   :  { %v1050_v63 = vpop.eup %850  ;;  %v409_v0 = vadd.f32 %v408_v62, %v407_v52  ;;  %v401_v1 = vrot.slane %v400_v58, 4 }
 0x1c1   :  { %v421_v2 = vsel %vm319_vm2, %v1050_v63, 0.0 }
 0x1c2   :  { %v1054_v3 = vpop.eup %852  ;;  %v410_v4 = vrot.slane %v409_v0, 2  ;;  %v402_v5 = vadd.f32 %v401_v1, %v400_v58  ;;  %v422_v6 = vrot.slane %v421_v2, 4 }
 0x1c3   :  { %v414_v7 = vsel %vm319_vm2, %v1054_v3, 0.0 }
 0x1c4   :  { %v411_v8 = vadd.f32 %v410_v4, %v409_v0  ;;  %v403_v9 = vrot.slane %v402_v5, 2  ;;  %v423_v10 = vadd.f32 %v422_v6, %v421_v2  ;;  %v415_v11 = vrot.slane %v414_v7, 4 }
 0x1c5   :  { %v1058_v12 = vpop.eup %854 }
 0x1c6   :  { %v412_v13 = vrot.slane %v411_v8, 1  ;;  %v404_v14 = vadd.f32 %v403_v9, %v402_v5  ;;  %v424_v15 = vrot.slane %v423_v10, 2  ;;  %v416_v16 = vadd.f32 %v415_v11, %v414_v7 }
 0x1c7   :  { %v1060_v17 = vpop.eup %856  ;;  %v435_v18 = vsel %vm319_vm2, %v1058_v12, 0.0 }
 0x1c8   :  { %v413_v19 = vadd.f32 %v412_v13, %v411_v8  ;;  %v405_v22 = vrot.slane %v404_v14, 1  ;;  %v425_v23 = vadd.f32 %v424_v15, %v423_v10  ;;  %v417_v24 = vrot.slane %v416_v16, 2 }
 0x1c9   :  { %v1064_v25 = vpop.eup %858  ;;  %v436_v29 = vrot.slane %v435_v18, 4  ;;  %v428_v33 = vsel %vm319_vm2, %v1060_v17, 0.0 }
 0x1ca   :  { %862 = vrcp.f32 %v413_v19  ;;  %v406_v34 = vadd.f32 %v405_v22, %v404_v14  ;;  %v426_v35 = vrot.slane %v425_v23, 1  ;;  %v418_v36 = vadd.f32 %v417_v24, %v416_v16 }
 0x1cb   :  { %v861_v38 = vpop.eup %860  ;;  %v437_v39 = vadd.f32 %v436_v29, %v435_v18  ;;  %v429_v40 = vrot.slane %v428_v33, 4  ;;  %v449_v42 = vsel %vm319_vm2, %v1064_v25, 0.0 }
 0x1cc   :  { %v427_v37 = vadd.f32 %v426_v35, %v425_v23  ;;  %v419_v43 = vrot.slane %v418_v36, 1  ;;  %v450_v44 = vrot.slane %v449_v42, 4  ;;  %v442_v45 = vsel %vm319_vm2, %v861_v38, 0.0 }
 0x1cd   :  { %v438_v47 = vrot.slane %v437_v39, 2  ;;  %v430_v48 = vadd.f32 %v429_v40, %v428_v33  ;;  %v443_v49 = vrot.slane %v442_v45, 4  ;;  %864 = vrcp.f32 %v406_v34 }
 0x1ce   :  { %v420_v41 = vadd.f32 %v419_v43, %v418_v36  ;;  %v451_v50 = vadd.f32 %v450_v44, %v449_v42  ;;  %866 = vrcp.f32 %v427_v37 }
 0x1cf   :  { %v439_v51 = vadd.f32 %v438_v47, %v437_v39  ;;  %v431_v53 = vrot.slane %v430_v48, 2  ;;  %v444_v54 = vadd.f32 %v443_v49, %v442_v45 }
 0x1d0   :  { %v452_v55 = vrot.slane %v451_v50, 2  ;;  %868 = vrcp.f32 %v420_v41 }
 0x1d1   :  { %v440_v56 = vrot.slane %v439_v51, 1  ;;  %v432_v46 = vadd.f32 %v431_v53, %v430_v48  ;;  %v445_v57 = vrot.slane %v444_v54, 2 }
 0x1d2   :  { %v453_v60 = vadd.f32 %v452_v55, %v451_v50 }
 0x1d3   :  { %v441_v52 = vadd.f32 %v440_v56, %v439_v51  ;;  %v433_v62 = vrot.slane %v432_v46, 1  ;;  %v446_v58 = vadd.f32 %v445_v57, %v444_v54 }
 0x1d4   :  { %v454_v0 = vrot.slane %v453_v60, 1 }
 0x1d5   :  { %v434_v1 = vadd.f32 %v433_v62, %v432_v46  ;;  %v447_v2 = vrot.slane %v446_v58, 1  ;;  %870 = vrcp.f32 %v441_v52 }
 0x1d6   :  { %v455_v4 = vadd.f32 %v454_v0, %v453_v60 }
 0x1d7   :  { %v863_v5 = vpop.eup %862  ;;  %v448_v6 = vadd.f32 %v447_v2, %v446_v58  ;;  %872 = vrcp.f32 %v434_v1 }
 0x1d8   :  { %v465_v7 = vmul.f32 %v863_v5, %v1042_v59  ;;  %874 = vrcp.f32 %v455_v4 }
 0x1d9   :  { %876 = vrcp.f32 %v448_v6 }
 0x1da   :  { %v865_v8 = vpop.eup %864  ;;  %473 = vst.msk [vmem:[%s1145_s6 + $0x8] sm:$0xff] %vm319_vm2, %v465_v7 }
 0x1db   :  { %v867_v9 = vpop.eup %866  ;;  %v464_v10 = vmul.f32 %v865_v8, %v1046_v61 }
 0x1dc   :  { %v467_v11 = vmul.f32 %v867_v9, %v1050_v63 }
 0x1dd   :  { %v869_v13 = vpop.eup %868  ;;  %472 = vst.msk [vmem:[%s1145_s6] sm:$0xff] %vm319_vm2, %v464_v10  ;;  %822 = vmatprep.mubr.msk.f32.mxu0 %vm319_vm2, %v464_v10 }
 0x1de   :  { %823 = vmatmul.mubr.msk.f32.vlgmr.msra.gmra.mxu0 %vm319_vm2, %v465_v7  ;;  %v466_v59 = vmul.f32 %v869_v13, %v1054_v3  ;;  %475 = vst.msk [vmem:[%s1145_s6 + $0x18] sm:$0xff] %vm319_vm2, %v467_v11 }
 0x1e0   :  { %474 = vst.msk [vmem:[%s1145_s6 + $0x10] sm:$0xff] %vm319_vm2, %v466_v59  ;;  %825 = vmatprep.mubr.msk.f32.mxu0 %vm319_vm2, %v466_v59 }
 0x1e2   :  { %v871_v61 = vpop.eup %870  ;;  %826 = vmatmul.mubr.msk.f32.gmra.mxu0 %vm319_vm2, %v467_v11 }
 0x1e3   :  { %v469_v63 = vmul.f32 %v871_v61, %v1058_v12 }
 0x1e4   :  { %v873_v14 = vpop.eup %872 }
 0x1e5   :  { %v875_v15 = vpop.eup %874  ;;  %v468_v3 = vmul.f32 %v873_v14, %v1060_v17  ;;  %477 = vst.msk [vmem:[%s1145_s6 + $0x28] sm:$0xff] %vm319_vm2, %v469_v63 }
 0x1e6   :  { %v877_v16 = vpop.eup %876  ;;  %v471_v18 = vmul.f32 %v875_v15, %v1064_v25 }
 0x1e7   :  { %476 = vst.msk [vmem:[%s1145_s6 + $0x20] sm:$0xff] %vm319_vm2, %v468_v3  ;;  %828 = vmatprep.mubr.msk.f32.mxu0 %vm319_vm2, %v468_v3  ;;  %v470_v12 = vmul.f32 %v877_v16, %v861_v38 }
 0x1e8   :  { %829 = vmatmul.mubr.msk.f32.gmra.mxu0 %vm319_vm2, %v469_v63  ;;  %479 = vst.msk [vmem:[%s1145_s6 + $0x38] sm:$0xff] %vm319_vm2, %v471_v18 }
 0x1e9   :  { %478 = vst.msk [vmem:[%s1145_s6 + $0x30] sm:$0xff] %vm319_vm2, %v470_v12  ;;  %831 = vmatprep.mubr.msk.f32.mxu0 %vm319_vm2, %v470_v12  ;;  %s925_s6 = smov [#allocation5]  }
 0x1ea   :  { %s708_s10 = sshll.u32 %s925_s6, 4  ;;  %s709_s10 = int_to_ptr.vmem [resolvable:$true] %s708_s10 }
 0x1eb   :  { %s898_s11 = scalar_lea.vmem %s709_s10, 128  ;;  %p903_p6 = scmp.lt.s32.totalorder %s709_s10, %s709_s10 }
 0x1ec   :  { %832 = vmatmul.mubr.msk.f32.gmra.mxu0 %vm319_vm2, %v471_v18  ;;  %p899_p5 = scmp.ne.s32.totalorder %s709_s10, %s898_s11  ;;  %p904_p7 = scmp.lt.s32.totalorder %s898_s11, %s898_s11 }
 0x1ee   :  { %p905_p8 = por %p904_p7, %p903_p6 }
 0x1f0   :  { %p906_p9 = pnand %p905_p8, %p899_p5 }
 0x29e   :  { %v824_v17 = vpop.f32.mrf.mxu0 }
 0x29f   :  { %v615_v19 = vmul.f32 %v824_v17, %v1001_v21 }
 0x2a0   :  { %v575_v22 = vpop.f32.mrf.mxu0 }
 0x2a1   :  { %v629_v23 = vsel %vm56_vm0, %v615_v19, 0.0  ;;  %v614_v24 = vmul.f32 %v575_v22, %v999_v20 }
 0x2a2   :  { %v630_v25 = vrot.slane %v629_v23, 4  ;;  %v827_v29 = vpop.f32.mrf.mxu0 }
 0x2a3   :  { %v622_v33 = vsel %vm56_vm0, %v614_v24, 0.0  ;;  %v617_v34 = vmul.f32 %v827_v29, %v1011_v28 }
 0x2a4   :  { %v631_v35 = vadd.f32 %v630_v25, %v629_v23  ;;  %v623_v36 = vrot.slane %v622_v33, 4  ;;  %v585_v38 = vpop.f32.mrf.mxu0 }
 0x2a5   :  { %v643_v39 = vsel %vm56_vm0, %v617_v34, 0.0  ;;  %v616_v40 = vmul.f32 %v585_v38, %v1007_v26 }
 0x2a6   :  { %v632_v42 = vrot.slane %v631_v35, 2  ;;  %v624_v21 = vadd.f32 %v623_v36, %v622_v33  ;;  %v644_v37 = vrot.slane %v643_v39, 4 }
 0x2a7   :  { %v636_v43 = vsel %vm56_vm0, %v616_v40, 0.0 }
 0x2a8   :  { %v625_v44 = vrot.slane %v624_v21, 2  ;;  %v645_v20 = vadd.f32 %v644_v37, %v643_v39  ;;  %v637_v45 = vrot.slane %v636_v43, 4  ;;  %v830_v47 = vpop.f32.mrf.mxu0  ;;  %v633_v49 = vadd.f32 %v632_v42, %v631_v35 }
 0x2a9   :  { %v619_v48 = vmul.f32 %v830_v47, %v1021_v31 }
 0x2aa   :  { %v626_v28 = vadd.f32 %v625_v44, %v624_v21  ;;  %v638_v41 = vadd.f32 %v637_v45, %v636_v43  ;;  %v595_v50 = vpop.f32.mrf.mxu0  ;;  %v646_v51 = vrot.slane %v645_v20, 2  ;;  %v634_v52 = vrot.slane %v633_v49, 1 }
 0x2ab   :  { %v657_v53 = vsel %vm56_vm0, %v619_v48, 0.0  ;;  %v618_v26 = vmul.f32 %v595_v50, %v1009_v27 }
 0x2ac   :  { %v639_v54 = vrot.slane %v638_v41, 2  ;;  %v833_v55 = vpop.f32.mrf.mxu0  ;;  %v627_v56 = vrot.slane %v626_v28, 1  ;;  %v658_v46 = vrot.slane %v657_v53, 4  ;;  %v647_v0 = vadd.f32 %v646_v51, %v645_v20 }
 0x2ad   :  { %v650_v57 = vsel %vm56_vm0, %v618_v26, 0.0  ;;  %v621_v60 = vmul.f32 %v833_v55, %v1027_v32  ;;  %v635_v13 = vadd.f32 %v634_v52, %v633_v49 }
 0x2ae   :  { %v640_v62 = vadd.f32 %v639_v54, %v638_v41  ;;  %v651_v31 = vrot.slane %v650_v57, 4  ;;  %v605_v58 = vpop.f32.mrf.mxu0  ;;  %v659_v1 = vadd.f32 %v658_v46, %v657_v53  ;;  %v628_v6 = vadd.f32 %v627_v56, %v626_v28 }
 0x2af   :  { %v671_v2 = vsel %vm56_vm0, %v621_v60, 0.0  ;;  %v620_v4 = vmul.f32 %v605_v58, %v1019_v30  ;;  %v648_v59 = vrot.slane %v647_v0, 1 }
 0x2b0   :  { %v641_v27 = vrot.slane %v640_v62, 1  ;;  %v652_v5 = vadd.f32 %v651_v31, %v650_v57  ;;  %v660_v7 = vrot.slane %v659_v1, 2  ;;  %v672_v8 = vrot.slane %v671_v2, 4 }
 0x2b1   :  { %v664_v9 = vsel %vm56_vm0, %v620_v4, 0.0  ;;  %v687_v30 = vsel %vm686_vm3, %v635_v13, %v628_v6  ;;  %v649_v17 = vadd.f32 %v648_v59, %v647_v0 }
 0x2b2   :  { %v642_v10 = vadd.f32 %v641_v27, %v640_v62  ;;  %v653_v32 = vrot.slane %v652_v5, 2  ;;  %v665_v11 = vrot.slane %v664_v9, 4  ;;  %v661_v61 = vadd.f32 %v660_v7, %v659_v1 }
 0x2b3   :  { %v673_v63 = vadd.f32 %v672_v8, %v671_v2 }
 0x2b4   :  { %v654_v14 = vadd.f32 %v653_v32, %v652_v5  ;;  %v666_v15 = vadd.f32 %v665_v11, %v664_v9  ;;  %v689_v16 = vsel %vm688_vm4, %v642_v10, %v687_v30  ;;  %v662_v19 = vrot.slane %v661_v61, 1 }
 0x2b5   :  { %v674_v3 = vrot.slane %v673_v63, 2  ;;  %v691_v29 = vsel %vm690_vm5, %v649_v17, %v689_v16 }
 0x2b6   :  { %v655_v18 = vrot.slane %v654_v14, 1  ;;  %v667_v12 = vrot.slane %v666_v15, 2  ;;  %v663_v35 = vadd.f32 %v662_v19, %v661_v61 }
 0x2b7   :  { %v675_v22 = vadd.f32 %v674_v3, %v673_v63 }
 0x2b8   :  { %v656_v23 = vadd.f32 %v655_v18, %v654_v14  ;;  %v668_v24 = vadd.f32 %v667_v12, %v666_v15 }
 0x2b9   :  { %v676_v25 = vrot.slane %v675_v22, 1 }
 0x2ba   :  { %v669_v33 = vrot.slane %v668_v24, 1  ;;  %v693_v34 = vsel %vm692_vm6, %v656_v23, %v691_v29 }
 0x2bb   :  { %v677_v38 = vadd.f32 %v676_v25, %v675_v22  ;;  %v695_v39 = vsel %vm694_vm7, %v663_v35, %v693_v34 }
 0x2bc   :  { %v670_v36 = vadd.f32 %v669_v33, %v668_v24 }
 0x2be   :  { %v697_v40 = vsel %vm696_vm8, %v670_v36, %v695_v39 }
 0x2bf   :  { %v699_v42 = vsel %vm698_vm9, %v677_v38, %v697_v40 }
 0x2c0   :  { %701 = vst.msk [vmem:[#allocation5] sm:$0xff] %vm56_vm0, %v699_v42 }
 0x2c1   :  { %909 = shalt.err (!%p906_p9)
}
 0x2c2   :  { %711 = dma.vmem_to_hbm [thread:$0]  %s709_s10, 128, %s1144_s5, [#allocation4]  }
 0x2c3   :  { %920 = dma.done.wait [#allocation4], 128  }
 0x2c4   :  { %921 = vsyncadd [#allocation4], 4294967168 }
 0x2c5   :  { %719 = vsyncpa [#allocation3], 1 }
 0x2c6   :  { %720 = vsyncpa [#allocation4], 1 }

</bundles_post_ra>
